<compile_context>
chip_gen: v7x
topology: tpu7x:2x2x1
jax: 0.10.0
libtpu: 0.0.40
codegen_flags: <defaults>
</compile_context>

<pallas_src>
import jax
import jax.numpy as jnp
from jax.experimental import pallas as pl
from jax.experimental.pallas import tpu as pltpu
import numpy as np


def lstm_kernel(x_ref, whs_ref, wxs_ref, bs_ref, wpT_ref, bpT_ref, h0_ref,
                out_ref):
    """Fused LSTM forward, fully unrolled over time, (batch, features) layout.

    x_ref:    (T, B)    scalar input per (time, batch)   [input_dim == 1]
    whs_ref:  (H, 4H)   stacked recurrent weights [Wgh^T | Wih^T | Wfh^T | Woh^T]
    wxs_ref:  (1, 4H)   stacked input weights     [Wgx^T | Wix^T | Wfx^T | Wox^T]
    bs_ref:   (1, 4H)   stacked gate biases       [bg^T  | bi^T  | bf^T  | bo^T ]
    wpT_ref:  (H, C)    output projection, transposed
    bpT_ref:  (1, C)    output bias, transposed
    h0_ref:   (1, H)    initial hidden state (Whinit^T, a zero parameter)
    out_ref:  (B, C)    logits == p.transpose(0, 1)
    """
    T, B = x_ref.shape
    H = h0_ref.shape[1]

    whs = whs_ref[...]            # (H, 4H)
    wxs = wxs_ref[...]            # (1, 4H)
    bs = bs_ref[...]              # (1, 4H)

    # Hoist the input + bias contribution out of the serial recurrence.
    # input_dim == 1, so it is an outer product: (T, B, 1) * (1, 1, 4H).
    # Layout (T, B, 4H): xc[t] is a whole (B, 4H) tile -> free per-step slice.
    x_tb = x_ref[...]                                               # (T, B)
    xc = x_tb[:, :, None] * wxs[None, :, :] + bs[None, :, :]        # (T, B, 4H)

    # i == 0 in the PyTorch code uses Whinit as the previous hidden state and
    # an implicit zero cell state, so the loop is uniform with these inits.
    h = jnp.broadcast_to(h0_ref[...], (B, H)).astype(jnp.float32)
    c = jnp.zeros((B, H), dtype=jnp.float32)

    # T is small and static: full unroll -> one (B,H)@(H,4H) MXU op per step.
    for t in range(T):
        z = xc[t] + jnp.dot(h, whs, preferred_element_type=jnp.float32)  # (B, 4H)
        sz = jax.nn.sigmoid(z)            # one full-width EUP pass (covers i/f/o lanes)
        g = jnp.tanh(z[:, 0:H])           # (B, H) — contiguous g lane range
        i = sz[:, H:2 * H]
        f = sz[:, 2 * H:3 * H]
        o = sz[:, 3 * H:4 * H]
        c = g * i + c * f
        h = jnp.tanh(c) * o

    # NOTE: the module also computes self.h_prev at i == 0 (Whx/Whh/bh branch),
    # but that value never feeds the output, so it is omitted here.

    # Output projection directly in (B, C) layout -> no final transpose.
    out = jnp.dot(h, wpT_ref[...], preferred_element_type=jnp.float32) + bpT_ref[...]
    out_ref[...] = out.astype(out_ref.dtype)


@jax.jit
def lstm_forward(x, params):
    """x: (seq_length, batch) float32 (input_dim == 1). Returns (batch, num_classes)."""
    T, B = x.shape
    H = params["Wgh"].shape[0]
    C = params["Wph"].shape[0]
    assert params["Wgx"].shape[1] == 1, "module semantics require input_dim == 1"
    f32 = jnp.float32

    # One-time parameter re-packing (pure layout work, outside the kernel).
    whs = jnp.concatenate([params["Wgh"].T, params["Wih"].T,
                           params["Wfh"].T, params["Woh"].T], axis=1).astype(f32)  # (H, 4H)
    wxs = jnp.concatenate([params["Wgx"].T, params["Wix"].T,
                           params["Wfx"].T, params["Wox"].T], axis=1).astype(f32)  # (1, 4H)
    bs = jnp.concatenate([params["bg"].T, params["bi"].T,
                          params["bf"].T, params["bo"].T], axis=1).astype(f32)     # (1, 4H)
    wpT = params["Wph"].T.astype(f32)     # (H, C)
    bpT = params["bp"].T.astype(f32)      # (1, C)
    h0 = params["Whinit"].T.astype(f32)   # (1, H)

    inputs = (x.astype(f32), whs, wxs, bs, wpT, bpT, h0)
    vmem = pltpu.MemorySpace.VMEM
    out = pl.pallas_call(
        lstm_kernel,
        out_shape=jax.ShapeDtypeStruct((B, C), f32),
        in_specs=[pl.BlockSpec(memory_space=vmem) for _ in inputs],
        out_specs=pl.BlockSpec(memory_space=vmem),
        # TODO(synk): if batch grows beyond toy size, add a batch grid axis with
        # dimension_semantics=("parallel",) so v7x's two TensorCores split it.
    )(*inputs)
    return out


def lstm_reference(x, params):
    """Pure-JAX reference mirroring the PyTorch forward (float32, (H,B) layout)."""
    T, B = x.shape
    H = params["Wgh"].shape[0]
    h = jnp.broadcast_to(params["Whinit"], (H, B))
    c = jnp.zeros((H, B), jnp.float32)
    for t in range(T):
        x_t = x[t][None, :]  # (1, B)
        g = jnp.tanh(params["Wgx"] @ x_t + params["Wgh"] @ h + params["bg"])
        i = jax.nn.sigmoid(params["Wix"] @ x_t + params["Wih"] @ h + params["bi"])
        f = jax.nn.sigmoid(params["Wfx"] @ x_t + params["Wfh"] @ h + params["bf"])
        o = jax.nn.sigmoid(params["Wox"] @ x_t + params["Woh"] @ h + params["bo"])
        c = g * i + c * f
        h = jnp.tanh(c) * o
    p = params["Wph"] @ h + params["bp"]
    return p.T


def init_params(key, input_dim, num_hidden, num_classes):
    """Deterministic synthetic init matching the module's shapes:
    weights ~ N(0, std=1e-4), biases = 0, Whinit = 0, Wph = ones."""
    std = 1e-4
    names = ["Wgx", "Wix", "Wfx", "Wox", "Wgh", "Wih", "Wfh", "Woh"]
    keys = jax.random.split(key, len(names))
    params = {}
    for n, k in zip(names, keys):
        shape = (num_hidden, input_dim) if n.endswith("x") else (num_hidden, num_hidden)
        params[n] = jax.random.normal(k, shape, dtype=jnp.float32) * std
    for n in ["bg", "bi", "bf", "bo"]:
        params[n] = jnp.zeros((num_hidden, 1), jnp.float32)
    params["Whinit"] = jnp.zeros((num_hidden, 1), jnp.float32)
    params["Wph"] = jnp.ones((num_classes, num_hidden), jnp.float32)
    params["bp"] = jnp.zeros((num_classes, 1), jnp.float32)
    # TODO(synk): Whx / Whh / bh exist in __init__ but only feed the dead
    # `h_prev` computation, so they are not materialized here.
    return params


if __name__ == "__main__":
    seq_length = 8
    input_dim = 1
    num_hidden = 32
    num_classes = 10
    batch_size = 8

    key = jax.random.PRNGKey(0)
    k_x, k_p = jax.random.split(key)
    x = jax.random.normal(k_x, (seq_length, batch_size), dtype=jnp.float32)
    params = init_params(k_p, input_dim, num_hidden, num_classes)

    out = lstm_forward(x, params)
    out = jax.block_until_ready(out)

    ref = lstm_reference(x, params)
    assert out.shape == (batch_size, num_classes), out.shape
    np.testing.assert_allclose(np.asarray(out), np.asarray(ref), rtol=1e-4, atol=1e-5)

    print("KERNEL_OK")
</pallas_src>

<mosaic_0001>
module attributes {stable_mosaic.version = 11 : i64} {
  func.func @lstm_kernel(%arg0: memref<8x8xf32, #tpu.memory_space<vmem>>, %arg1: memref<32x128xf32, #tpu.memory_space<vmem>>, %arg2: memref<1x128xf32, #tpu.memory_space<vmem>>, %arg3: memref<1x128xf32, #tpu.memory_space<vmem>>, %arg4: memref<32x10xf32, #tpu.memory_space<vmem>>, %arg5: memref<1x10xf32, #tpu.memory_space<vmem>>, %arg6: memref<1x32xf32, #tpu.memory_space<vmem>>, %arg7: memref<8x10xf32, #tpu.memory_space<vmem>>) attributes {dimension_semantics = [], scalar_prefetch = 0 : i64, scratch_operands = 0 : i64, tpu.core_type = #tpu.core_type<tc>} {
    %c0 = arith.constant 0 : index
    %c0_0 = arith.constant 0 : index
    %0 = vector.load %arg1[%c0, %c0_0] : memref<32x128xf32, #tpu.memory_space<vmem>>, vector<32x128xf32>
    %c0_1 = arith.constant 0 : index
    %c0_2 = arith.constant 0 : index
    %1 = vector.load %arg2[%c0_1, %c0_2] : memref<1x128xf32, #tpu.memory_space<vmem>>, vector<1x128xf32>
    %c0_3 = arith.constant 0 : index
    %c0_4 = arith.constant 0 : index
    %2 = vector.load %arg3[%c0_3, %c0_4] : memref<1x128xf32, #tpu.memory_space<vmem>>, vector<1x128xf32>
    %c0_5 = arith.constant 0 : index
    %c0_6 = arith.constant 0 : index
    %3 = vector.load %arg0[%c0_5, %c0_6] : memref<8x8xf32, #tpu.memory_space<vmem>>, vector<8x8xf32>
    %4 = vector.shape_cast %3 : vector<8x8xf32> to vector<8x8x1xf32>
    %5 = vector.shape_cast %1 : vector<1x128xf32> to vector<1x1x128xf32>
    %6 = vector.broadcast %4 : vector<8x8x1xf32> to vector<8x8x128xf32>
    %7 = vector.broadcast %5 : vector<1x1x128xf32> to vector<8x8x128xf32>
    %8 = arith.mulf %6, %7 : vector<8x8x128xf32>
    %9 = vector.shape_cast %2 : vector<1x128xf32> to vector<1x1x128xf32>
    %10 = vector.broadcast %9 : vector<1x1x128xf32> to vector<8x8x128xf32>
    %11 = arith.addf %8, %10 : vector<8x8x128xf32>
    %c0_7 = arith.constant 0 : index
    %c0_8 = arith.constant 0 : index
    %12 = vector.load %arg6[%c0_7, %c0_8] : memref<1x32xf32, #tpu.memory_space<vmem>>, vector<1x32xf32>
    %13 = vector.shape_cast %12 : vector<1x32xf32> to vector<1x32xf32>
    %14 = vector.broadcast %13 : vector<1x32xf32> to vector<8x32xf32>
    %cst = arith.constant 0.000000e+00 : f32
    %15 = vector.broadcast %cst : f32 to vector<8x32xf32>
    %16 = vector.extract_strided_slice %11 {offsets = [0, 0, 0], sizes = [1, 8, 128], strides = [1, 1, 1]} : vector<8x8x128xf32> to vector<1x8x128xf32>
    %17 = vector.shape_cast %16 : vector<1x8x128xf32> to vector<8x128xf32>
    %cst_9 = arith.constant dense<0.000000e+00> : vector<8x128xf32>
    %18 = tpu.matmul %14, %0, %cst_9 {dimension_numbers = #tpu.dot_dimension_numbers<[1], [0], [0], [1], [0, 0, 1, 1], [], []>} : vector<8x32xf32>, vector<32x128xf32>, vector<8x128xf32> -> vector<8x128xf32>
    %19 = arith.addf %17, %18 : vector<8x128xf32>
    %20 = arith.negf %19 : vector<8x128xf32>
    %21 = math.exp %20 : vector<8x128xf32>
    %cst_10 = arith.constant 1.000000e+00 : f32
    %22 = vector.broadcast %cst_10 : f32 to vector<8x128xf32>
    %23 = arith.addf %22, %21 : vector<8x128xf32>
    %24 = arith.divf %22, %23 : vector<8x128xf32>
    %25 = vector.extract_strided_slice %19 {offsets = [0, 0], sizes = [8, 32], strides = [1, 1]} : vector<8x128xf32> to vector<8x32xf32>
    %26 = math.tanh %25 : vector<8x32xf32>
    %27 = vector.extract_strided_slice %24 {offsets = [0, 32], sizes = [8, 32], strides = [1, 1]} : vector<8x128xf32> to vector<8x32xf32>
    %28 = vector.extract_strided_slice %24 {offsets = [0, 64], sizes = [8, 32], strides = [1, 1]} : vector<8x128xf32> to vector<8x32xf32>
    %29 = vector.extract_strided_slice %24 {offsets = [0, 96], sizes = [8, 32], strides = [1, 1]} : vector<8x128xf32> to vector<8x32xf32>
    %30 = arith.mulf %26, %27 : vector<8x32xf32>
    %31 = arith.mulf %15, %28 : vector<8x32xf32>
    %32 = arith.addf %30, %31 : vector<8x32xf32>
    %33 = math.tanh %32 : vector<8x32xf32>
    %34 = arith.mulf %33, %29 : vector<8x32xf32>
    %35 = vector.extract_strided_slice %11 {offsets = [1, 0, 0], sizes = [1, 8, 128], strides = [1, 1, 1]} : vector<8x8x128xf32> to vector<1x8x128xf32>
    %36 = vector.shape_cast %35 : vector<1x8x128xf32> to vector<8x128xf32>
    %cst_11 = arith.constant dense<0.000000e+00> : vector<8x128xf32>
    %37 = tpu.matmul %34, %0, %cst_11 {dimension_numbers = #tpu.dot_dimension_numbers<[1], [0], [0], [1], [0, 0, 1, 1], [], []>} : vector<8x32xf32>, vector<32x128xf32>, vector<8x128xf32> -> vector<8x128xf32>
    %38 = arith.addf %36, %37 : vector<8x128xf32>
    %39 = arith.negf %38 : vector<8x128xf32>
    %40 = math.exp %39 : vector<8x128xf32>
    %cst_12 = arith.constant 1.000000e+00 : f32
    %41 = vector.broadcast %cst_12 : f32 to vector<8x128xf32>
    %42 = arith.addf %41, %40 : vector<8x128xf32>
    %43 = arith.divf %41, %42 : vector<8x128xf32>
    %44 = vector.extract_strided_slice %38 {offsets = [0, 0], sizes = [8, 32], strides = [1, 1]} : vector<8x128xf32> to vector<8x32xf32>
    %45 = math.tanh %44 : vector<8x32xf32>
    %46 = vector.extract_strided_slice %43 {offsets = [0, 32], sizes = [8, 32], strides = [1, 1]} : vector<8x128xf32> to vector<8x32xf32>
    %47 = vector.extract_strided_slice %43 {offsets = [0, 64], sizes = [8, 32], strides = [1, 1]} : vector<8x128xf32> to vector<8x32xf32>
    %48 = vector.extract_strided_slice %43 {offsets = [0, 96], sizes = [8, 32], strides = [1, 1]} : vector<8x128xf32> to vector<8x32xf32>
    %49 = arith.mulf %45, %46 : vector<8x32xf32>
    %50 = arith.mulf %32, %47 : vector<8x32xf32>
    %51 = arith.addf %49, %50 : vector<8x32xf32>
    %52 = math.tanh %51 : vector<8x32xf32>
    %53 = arith.mulf %52, %48 : vector<8x32xf32>
    %54 = vector.extract_strided_slice %11 {offsets = [2, 0, 0], sizes = [1, 8, 128], strides = [1, 1, 1]} : vector<8x8x128xf32> to vector<1x8x128xf32>
    %55 = vector.shape_cast %54 : vector<1x8x128xf32> to vector<8x128xf32>
    %cst_13 = arith.constant dense<0.000000e+00> : vector<8x128xf32>
    %56 = tpu.matmul %53, %0, %cst_13 {dimension_numbers = #tpu.dot_dimension_numbers<[1], [0], [0], [1], [0, 0, 1, 1], [], []>} : vector<8x32xf32>, vector<32x128xf32>, vector<8x128xf32> -> vector<8x128xf32>
    %57 = arith.addf %55, %56 : vector<8x128xf32>
    %58 = arith.negf %57 : vector<8x128xf32>
    %59 = math.exp %58 : vector<8x128xf32>
    %cst_14 = arith.constant 1.000000e+00 : f32
    %60 = vector.broadcast %cst_14 : f32 to vector<8x128xf32>
    %61 = arith.addf %60, %59 : vector<8x128xf32>
    %62 = arith.divf %60, %61 : vector<8x128xf32>
    %63 = vector.extract_strided_slice %57 {offsets = [0, 0], sizes = [8, 32], strides = [1, 1]} : vector<8x128xf32> to vector<8x32xf32>
    %64 = math.tanh %63 : vector<8x32xf32>
    %65 = vector.extract_strided_slice %62 {offsets = [0, 32], sizes = [8, 32], strides = [1, 1]} : vector<8x128xf32> to vector<8x32xf32>
    %66 = vector.extract_strided_slice %62 {offsets = [0, 64], sizes = [8, 32], strides = [1, 1]} : vector<8x128xf32> to vector<8x32xf32>
    %67 = vector.extract_strided_slice %62 {offsets = [0, 96], sizes = [8, 32], strides = [1, 1]} : vector<8x128xf32> to vector<8x32xf32>
    %68 = arith.mulf %64, %65 : vector<8x32xf32>
    %69 = arith.mulf %51, %66 : vector<8x32xf32>
    %70 = arith.addf %68, %69 : vector<8x32xf32>
    %71 = math.tanh %70 : vector<8x32xf32>
    %72 = arith.mulf %71, %67 : vector<8x32xf32>
    %73 = vector.extract_strided_slice %11 {offsets = [3, 0, 0], sizes = [1, 8, 128], strides = [1, 1, 1]} : vector<8x8x128xf32> to vector<1x8x128xf32>
    %74 = vector.shape_cast %73 : vector<1x8x128xf32> to vector<8x128xf32>
    %cst_15 = arith.constant dense<0.000000e+00> : vector<8x128xf32>
    %75 = tpu.matmul %72, %0, %cst_15 {dimension_numbers = #tpu.dot_dimension_numbers<[1], [0], [0], [1], [0, 0, 1, 1], [], []>} : vector<8x32xf32>, vector<32x128xf32>, vector<8x128xf32> -> vector<8x128xf32>
    %76 = arith.addf %74, %75 : vector<8x128xf32>
    %77 = arith.negf %76 : vector<8x128xf32>
    %78 = math.exp %77 : vector<8x128xf32>
    %cst_16 = arith.constant 1.000000e+00 : f32
    %79 = vector.broadcast %cst_16 : f32 to vector<8x128xf32>
    %80 = arith.addf %79, %78 : vector<8x128xf32>
    %81 = arith.divf %79, %80 : vector<8x128xf32>
    %82 = vector.extract_strided_slice %76 {offsets = [0, 0], sizes = [8, 32], strides = [1, 1]} : vector<8x128xf32> to vector<8x32xf32>
    %83 = math.tanh %82 : vector<8x32xf32>
    %84 = vector.extract_strided_slice %81 {offsets = [0, 32], sizes = [8, 32], strides = [1, 1]} : vector<8x128xf32> to vector<8x32xf32>
    %85 = vector.extract_strided_slice %81 {offsets = [0, 64], sizes = [8, 32], strides = [1, 1]} : vector<8x128xf32> to vector<8x32xf32>
    %86 = vector.extract_strided_slice %81 {offsets = [0, 96], sizes = [8, 32], strides = [1, 1]} : vector<8x128xf32> to vector<8x32xf32>
    %87 = arith.mulf %83, %84 : vector<8x32xf32>
    %88 = arith.mulf %70, %85 : vector<8x32xf32>
    %89 = arith.addf %87, %88 : vector<8x32xf32>
    %90 = math.tanh %89 : vector<8x32xf32>
    %91 = arith.mulf %90, %86 : vector<8x32xf32>
    %92 = vector.extract_strided_slice %11 {offsets = [4, 0, 0], sizes = [1, 8, 128], strides = [1, 1, 1]} : vector<8x8x128xf32> to vector<1x8x128xf32>
    %93 = vector.shape_cast %92 : vector<1x8x128xf32> to vector<8x128xf32>
    %cst_17 = arith.constant dense<0.000000e+00> : vector<8x128xf32>
    %94 = tpu.matmul %91, %0, %cst_17 {dimension_numbers = #tpu.dot_dimension_numbers<[1], [0], [0], [1], [0, 0, 1, 1], [], []>} : vector<8x32xf32>, vector<32x128xf32>, vector<8x128xf32> -> vector<8x128xf32>
    %95 = arith.addf %93, %94 : vector<8x128xf32>
    %96 = arith.negf %95 : vector<8x128xf32>
    %97 = math.exp %96 : vector<8x128xf32>
    %cst_18 = arith.constant 1.000000e+00 : f32
    %98 = vector.broadcast %cst_18 : f32 to vector<8x128xf32>
    %99 = arith.addf %98, %97 : vector<8x128xf32>
    %100 = arith.divf %98, %99 : vector<8x128xf32>
    %101 = vector.extract_strided_slice %95 {offsets = [0, 0], sizes = [8, 32], strides = [1, 1]} : vector<8x128xf32> to vector<8x32xf32>
    %102 = math.tanh %101 : vector<8x32xf32>
    %103 = vector.extract_strided_slice %100 {offsets = [0, 32], sizes = [8, 32], strides = [1, 1]} : vector<8x128xf32> to vector<8x32xf32>
    %104 = vector.extract_strided_slice %100 {offsets = [0, 64], sizes = [8, 32], strides = [1, 1]} : vector<8x128xf32> to vector<8x32xf32>
    %105 = vector.extract_strided_slice %100 {offsets = [0, 96], sizes = [8, 32], strides = [1, 1]} : vector<8x128xf32> to vector<8x32xf32>
    %106 = arith.mulf %102, %103 : vector<8x32xf32>
    %107 = arith.mulf %89, %104 : vector<8x32xf32>
    %108 = arith.addf %106, %107 : vector<8x32xf32>
    %109 = math.tanh %108 : vector<8x32xf32>
    %110 = arith.mulf %109, %105 : vector<8x32xf32>
    %111 = vector.extract_strided_slice %11 {offsets = [5, 0, 0], sizes = [1, 8, 128], strides = [1, 1, 1]} : vector<8x8x128xf32> to vector<1x8x128xf32>
    %112 = vector.shape_cast %111 : vector<1x8x128xf32> to vector<8x128xf32>
    %cst_19 = arith.constant dense<0.000000e+00> : vector<8x128xf32>
    %113 = tpu.matmul %110, %0, %cst_19 {dimension_numbers = #tpu.dot_dimension_numbers<[1], [0], [0], [1], [0, 0, 1, 1], [], []>} : vector<8x32xf32>, vector<32x128xf32>, vector<8x128xf32> -> vector<8x128xf32>
    %114 = arith.addf %112, %113 : vector<8x128xf32>
    %115 = arith.negf %114 : vector<8x128xf32>
    %116 = math.exp %115 : vector<8x128xf32>
    %cst_20 = arith.constant 1.000000e+00 : f32
    %117 = vector.broadcast %cst_20 : f32 to vector<8x128xf32>
    %118 = arith.addf %117, %116 : vector<8x128xf32>
    %119 = arith.divf %117, %118 : vector<8x128xf32>
    %120 = vector.extract_strided_slice %114 {offsets = [0, 0], sizes = [8, 32], strides = [1, 1]} : vector<8x128xf32> to vector<8x32xf32>
    %121 = math.tanh %120 : vector<8x32xf32>
    %122 = vector.extract_strided_slice %119 {offsets = [0, 32], sizes = [8, 32], strides = [1, 1]} : vector<8x128xf32> to vector<8x32xf32>
    %123 = vector.extract_strided_slice %119 {offsets = [0, 64], sizes = [8, 32], strides = [1, 1]} : vector<8x128xf32> to vector<8x32xf32>
    %124 = vector.extract_strided_slice %119 {offsets = [0, 96], sizes = [8, 32], strides = [1, 1]} : vector<8x128xf32> to vector<8x32xf32>
    %125 = arith.mulf %121, %122 : vector<8x32xf32>
    %126 = arith.mulf %108, %123 : vector<8x32xf32>
    %127 = arith.addf %125, %126 : vector<8x32xf32>
    %128 = math.tanh %127 : vector<8x32xf32>
    %129 = arith.mulf %128, %124 : vector<8x32xf32>
    %130 = vector.extract_strided_slice %11 {offsets = [6, 0, 0], sizes = [1, 8, 128], strides = [1, 1, 1]} : vector<8x8x128xf32> to vector<1x8x128xf32>
    %131 = vector.shape_cast %130 : vector<1x8x128xf32> to vector<8x128xf32>
    %cst_21 = arith.constant dense<0.000000e+00> : vector<8x128xf32>
    %132 = tpu.matmul %129, %0, %cst_21 {dimension_numbers = #tpu.dot_dimension_numbers<[1], [0], [0], [1], [0, 0, 1, 1], [], []>} : vector<8x32xf32>, vector<32x128xf32>, vector<8x128xf32> -> vector<8x128xf32>
    %133 = arith.addf %131, %132 : vector<8x128xf32>
    %134 = arith.negf %133 : vector<8x128xf32>
    %135 = math.exp %134 : vector<8x128xf32>
    %cst_22 = arith.constant 1.000000e+00 : f32
    %136 = vector.broadcast %cst_22 : f32 to vector<8x128xf32>
    %137 = arith.addf %136, %135 : vector<8x128xf32>
    %138 = arith.divf %136, %137 : vector<8x128xf32>
    %139 = vector.extract_strided_slice %133 {offsets = [0, 0], sizes = [8, 32], strides = [1, 1]} : vector<8x128xf32> to vector<8x32xf32>
    %140 = math.tanh %139 : vector<8x32xf32>
    %141 = vector.extract_strided_slice %138 {offsets = [0, 32], sizes = [8, 32], strides = [1, 1]} : vector<8x128xf32> to vector<8x32xf32>
    %142 = vector.extract_strided_slice %138 {offsets = [0, 64], sizes = [8, 32], strides = [1, 1]} : vector<8x128xf32> to vector<8x32xf32>
    %143 = vector.extract_strided_slice %138 {offsets = [0, 96], sizes = [8, 32], strides = [1, 1]} : vector<8x128xf32> to vector<8x32xf32>
    %144 = arith.mulf %140, %141 : vector<8x32xf32>
    %145 = arith.mulf %127, %142 : vector<8x32xf32>
    %146 = arith.addf %144, %145 : vector<8x32xf32>
    %147 = math.tanh %146 : vector<8x32xf32>
    %148 = arith.mulf %147, %143 : vector<8x32xf32>
    %149 = vector.extract_strided_slice %11 {offsets = [7, 0, 0], sizes = [1, 8, 128], strides = [1, 1, 1]} : vector<8x8x128xf32> to vector<1x8x128xf32>
    %150 = vector.shape_cast %149 : vector<1x8x128xf32> to vector<8x128xf32>
    %cst_23 = arith.constant dense<0.000000e+00> : vector<8x128xf32>
    %151 = tpu.matmul %148, %0, %cst_23 {dimension_numbers = #tpu.dot_dimension_numbers<[1], [0], [0], [1], [0, 0, 1, 1], [], []>} : vector<8x32xf32>, vector<32x128xf32>, vector<8x128xf32> -> vector<8x128xf32>
    %152 = arith.addf %150, %151 : vector<8x128xf32>
    %153 = arith.negf %152 : vector<8x128xf32>
    %154 = math.exp %153 : vector<8x128xf32>
    %cst_24 = arith.constant 1.000000e+00 : f32
    %155 = vector.broadcast %cst_24 : f32 to vector<8x128xf32>
    %156 = arith.addf %155, %154 : vector<8x128xf32>
    %157 = arith.divf %155, %156 : vector<8x128xf32>
    %158 = vector.extract_strided_slice %152 {offsets = [0, 0], sizes = [8, 32], strides = [1, 1]} : vector<8x128xf32> to vector<8x32xf32>
    %159 = math.tanh %158 : vector<8x32xf32>
    %160 = vector.extract_strided_slice %157 {offsets = [0, 32], sizes = [8, 32], strides = [1, 1]} : vector<8x128xf32> to vector<8x32xf32>
    %161 = vector.extract_strided_slice %157 {offsets = [0, 64], sizes = [8, 32], strides = [1, 1]} : vector<8x128xf32> to vector<8x32xf32>
    %162 = vector.extract_strided_slice %157 {offsets = [0, 96], sizes = [8, 32], strides = [1, 1]} : vector<8x128xf32> to vector<8x32xf32>
    %163 = arith.mulf %159, %160 : vector<8x32xf32>
    %164 = arith.mulf %146, %161 : vector<8x32xf32>
    %165 = arith.addf %163, %164 : vector<8x32xf32>
    %166 = math.tanh %165 : vector<8x32xf32>
    %167 = arith.mulf %166, %162 : vector<8x32xf32>
    %c0_25 = arith.constant 0 : index
    %c0_26 = arith.constant 0 : index
    %168 = vector.load %arg4[%c0_25, %c0_26] : memref<32x10xf32, #tpu.memory_space<vmem>>, vector<32x10xf32>
    %cst_27 = arith.constant dense<0.000000e+00> : vector<8x10xf32>
    %169 = tpu.matmul %167, %168, %cst_27 {dimension_numbers = #tpu.dot_dimension_numbers<[1], [0], [0], [1], [0, 0, 1, 1], [], []>} : vector<8x32xf32>, vector<32x10xf32>, vector<8x10xf32> -> vector<8x10xf32>
    %c0_28 = arith.constant 0 : index
    %c0_29 = arith.constant 0 : index
    %170 = vector.load %arg5[%c0_28, %c0_29] : memref<1x10xf32, #tpu.memory_space<vmem>>, vector<1x10xf32>
    %171 = vector.broadcast %170 : vector<1x10xf32> to vector<8x10xf32>
    %172 = arith.addf %169, %171 : vector<8x10xf32>
    %c0_30 = arith.constant 0 : index
    %c0_31 = arith.constant 0 : index
    %173 = vector.load %arg7[%c0_30, %c0_31] : memref<8x10xf32, #tpu.memory_space<vmem>>, vector<8x10xf32>
    tpu.vector_store %arg7[%c0_30, %c0_31], %172 {strides = array<i32>} : memref<8x10xf32, #tpu.memory_space<vmem>>, vector<8x10xf32>,
    return
  }
}

</mosaic_0001>

<bundles_post_ra>
// kernel: lstm_forward.1
= control target key start
LH: loop header
LB: loop body
LE: loop exit
PB: predicated region body
PF: predicated region fallthrough
CT: control target
= control target key end

     0   :  { %v34_v3 = vlaneseq  ;;  %v1307_v4 = vmov 0.0|0.0   ;;  %vm1308_vm0 = vmmov 0   ;;  %v1309_v7 = vmov 0.0   ;;  %s1534_s0 = inlined_call_operand.vmem [shape: f32[8,8], index: 0, kind: input, shape index: {}]   ;;  %s1535_s1 = inlined_call_operand.vmem [shape: f32[32,128], index: 1, kind: input, shape index: {}]   ;;  %s1536_s2 = inlined_call_operand.vmem [shape: f32[1,128], index: 2, kind: input, shape index: {}]   ;;  %s1537_s3 = inlined_call_operand.vmem [shape: f32[1,128], index: 3, kind: input, shape index: {}]   ;;  %s1538_s4 = inlined_call_operand.vmem [shape: f32[32,10], index: 4, kind: input, shape index: {}]   ;;  %s1539_s5 = inlined_call_operand.vmem [shape: f32[1,10], index: 5, kind: input, shape index: {}]   ;;  %s1540_s6 = inlined_call_operand.vmem [shape: f32[1,32], index: 6, kind: input, shape index: {}]   ;;  %s1541_s7 = inlined_call_operand.hbm [shape: f32[8,10], index: 7, kind: output, shape index: {}]  }
   0x1   :  { %v27_v0 = vld [vmem:[%s1535_s1] sm:$0xff]  ;;  %v28_v1 = vld [vmem:[%s1535_s1 + $0x8] sm:$0xff]  ;;  %v29_v2 = vld [vmem:[%s1535_s1 + $0x10] sm:$0xff]  ;;  %1158 = vmatprep.subr.bf16.mxu0 %v1307_v4  ;;  %1067 = vmatprep.mubr.msk.f32.mxu0 %vm1308_vm0, %v1309_v7 }
   0x2   :  { %v1364_v5 = vpack.c.bf16 %v28_v1, %v27_v0  ;;  %v30_v6 = vld [vmem:[%s1535_s1 + $0x18] sm:$0xff]  ;;  %v1371_v8 = vshrl.u32 %v34_v3, 7  ;;  %1164 = vmatprep.subr.bf16.mxu1 %v1307_v4  ;;  %1078 = vmatprep.mubr.msk.f32.mxu1 %vm1308_vm0, %v1309_v7  ;;  %v1382_v10 = vld [vmem:[%s1534_s0] sm:$0xff] }
   0x3   :  { %v1377_v9 = vpack.c.bf16 %v30_v6, %v29_v2 }
   0x4   :  { %1160 = vmatpush3.bf16.msra.mxu0 %v1364_v5  ;;  %1166 = vmatpush3.bf16.msra.mxu1 %v1364_v5 }
   0x5   :  { %12 = vsyncpa [#allocation3], 0  ;;  %1161 = vmatprep.subr.bf16.mxu0 %v1307_v4  ;;  %v36_v11 = vsub.s32 0, %v1371_v8  ;;  %1167 = vmatprep.subr.bf16.mxu1 %v1307_v4  ;;  %v995_v13 = vld [vmem:[%s1540_s6] ss:$0 sm:$0xff]  ;;  %vm124_vm1 = vcmask 261120  }
   0x6   :  { %v1406_v15 = vld [vmem:[%s1536_s2] ss:$0 sm:$0xff]  ;;  %s1310_s2 = smov 96   ;;  %s1311_s14 = smov 64   ;;  %v43_v27 = vsub.s32 1, %v1371_v8  ;;  %v50_v47 = vsub.s32 2, %v1371_v8 }
   0x7   :  { %v37_v12 = vrot.slane %v1382_v10, %v36_v11  ;;  %v1412_v17 = vld [vmem:[%s1537_s3] ss:$0 sm:$0xff]  ;;  %s1312_s3 = smov 32   ;;  %v57_v6 = vsub.s32 3, %v1371_v8  ;;  %s1313_s24 = smov [#allocation2]   ;;  %vm977_vm2 = vcmask 80896  }
   0x8   :  { %1163 = vmatpush3.bf16.msra.mxu0 %v1377_v9  ;;  %1169 = vmatpush3.bf16.msra.mxu1 %v1377_v9  ;;  %v44_v28 = vrot.slane %v1382_v10, %v43_v27  ;;  %v51_v48 = vrot.slane %v1382_v10, %v50_v47  ;;  %s985_s25 = sshll.u32 %s1313_s24, 4  ;;  %s986_s25 = int_to_ptr.vmem [resolvable:$true] %s985_s25 }
   0x9   :  { %39 = vbcast.lane.b32.xlu0 %v37_v12, 256  ;;  %1170 = vmatprep.subr.bf16.mxu0 %v1307_v4  ;;  %v58_v11 = vrot.slane %v1382_v10, %v57_v6  ;;  %s1283_s26 = scalar_lea.vmem %s986_s25, 128  ;;  %p1288_p1 = scmp.lt.s32.totalorder %s986_s25, %s986_s25 }
   0xa   :  { %1176 = vmatprep.subr.bf16.mxu1 %v1307_v4  ;;  %p1284_p0 = scmp.ne.s32.totalorder %s986_s25, %s1283_s26  ;;  %p1289_p2 = scmp.lt.s32.totalorder %s1283_s26, %s1283_s26 }
   0xb   :  { %1068 = vmatmul.mubr.msk.f32.vlgmr.msra.gmra.mrb[0].mxu0 %vm124_vm1, %v995_v13 }
   0xc   :  { %1172 = vmatpush3.bf16.msra.mxu0 %v1364_v5  ;;  %1089 = vmatprep.mubr.msk.f32.mxu0 %vm1308_vm0, %v1309_v7  ;;  %p1290_p3 = por %p1289_p2, %p1288_p1 }
   0xd   :  { %1173 = vmatprep.subr.bf16.mxu0 %v1307_v4 }
   0xe   :  { %p1291_p4 = pnand %p1290_p3, %p1284_p0 }
  0x10   :  { %1175 = vmatpush3.bf16.msra.mxu0 %v1377_v9 }
  0x11   :  { %1182 = vmatprep.subr.bf16.mxu0 %v1307_v4 }
  0x7b   :  { %v40_v14 = vpop.permute.xlu0 %39 }
  0x7c   :  { %v96_v16 = vmul.f32 %v1406_v15, %v40_v14 }
  0x7e   :  { %v110_v18 = vadd.f32 %v1412_v17, %v96_v16 }
  0xde   :  { %v193_v19 = vpop.f32.mrb[0].mxu0 }
  0xdf   :  { %v197_v20 = vadd.f32 %v193_v19, %v110_v18  ;;  %v1069_v21 = vpop.f32.mrb[1].mxu0 }
  0xe1   :  { %v997_v22 = vmul.f32 -1.442695, %v197_v20 }
  0xe3   :  { %1219 = vpow2.f32 %v997_v22 }
  0xed   :  { %v1220_v23 = vpop.eup %1219 }
  0xee   :  { %v201_v24 = vadd.f32 1.0, %v1220_v23 }
  0xf0   :  { %1221 = vrcp.f32 %v201_v24 }
  0xf1   :  { %1223 = vtanh.f32 %v197_v20 }
  0xfa   :  { %v1222_v25 = vpop.eup %1221 }
  0xfb   :  { %206 = vrot.lane.b32.xlu0 %v1222_v25, %s1310_s2  ;;  %v210_v26 = vmul.f32 0.0, %v1222_v25  ;;  %v1224_v29 = vpop.eup %1223 }
  0xfd   :  { %212 = vrot.lane.b32.xlu1 %v210_v26, %s1311_s14 }
  0xff   :  { %46 = vbcast.lane.b32.xlu0 %v44_v28, 256 }
 0x101   :  { %217 = vrot.lane.b32.xlu1 %v1222_v25, %s1312_s3 }
 0x16d   :  { %v207_v30 = vpop.permute.xlu0 %206 }
 0x16e   :  { %v209_v31 = vmul.f32 %v1224_v29, %v207_v30 }
 0x16f   :  { %v213_v32 = vpop.permute.xlu1 %212 }
 0x170   :  { %v215_v33 = vadd.f32 %v213_v32, %v209_v31 }
 0x171   :  { %v47_v37 = vpop.permute.xlu0 %46 }
 0x172   :  { %1225 = vtanh.f32 %v215_v33  ;;  %v97_v38 = vmul.f32 %v1406_v15, %v47_v37 }
 0x173   :  { %v218_v35 = vpop.permute.xlu1 %217 }
 0x174   :  { %v111_v39 = vadd.f32 %v1412_v17, %v97_v38 }
 0x17c   :  { %v1226_v34 = vpop.eup %1225 }
 0x17d   :  { %v220_v36 = vmul.f32 %v1226_v34, %v218_v35 }
 0x17f   :  { %1079 = vmatmul.mubr.msk.f32.vlgmr.msra.gmra.mrb[0].mxu1 %vm124_vm1, %v220_v36 }
 0x180   :  { %1178 = vmatpush3.bf16.msra.mxu1 %v1364_v5  ;;  %1100 = vmatprep.mubr.msk.f32.mxu1 %vm1308_vm0, %v1309_v7 }
 0x181   :  { %1179 = vmatprep.subr.bf16.mxu1 %v1307_v4 }
 0x184   :  { %1181 = vmatpush3.bf16.msra.mxu1 %v1377_v9 }
 0x185   :  { %1188 = vmatprep.subr.bf16.mxu1 %v1307_v4 }
 0x252   :  { %v290_v40 = vpop.f32.mrb[0].mxu1 }
 0x253   :  { %v294_v41 = vadd.f32 %v290_v40, %v111_v39  ;;  %v1080_v42 = vpop.f32.mrb[1].mxu1 }
 0x255   :  { %v999_v43 = vmul.f32 -1.442695, %v294_v41 }
 0x257   :  { %1227 = vpow2.f32 %v999_v43 }
 0x261   :  { %v1228_v44 = vpop.eup %1227 }
 0x262   :  { %v298_v45 = vadd.f32 1.0, %v1228_v44 }
 0x264   :  { %1229 = vrcp.f32 %v298_v45 }
 0x265   :  { %1231 = vtanh.f32 %v294_v41 }
 0x26e   :  { %v1230_v46 = vpop.eup %1229 }
 0x26f   :  { %307 = vrot.lane.b32.xlu0 %v1230_v46, %s1311_s14  ;;  %303 = vrot.lane.b32.xlu1 %v1230_v46, %s1310_s2  ;;  %v1232_v49 = vpop.eup %1231 }
 0x273   :  { %313 = vrot.lane.b32.xlu1 %v1230_v46, %s1312_s3  ;;  %53 = vbcast.lane.b32.xlu0 %v51_v48, 256 }
 0x2e1   :  { %v308_v50 = vpop.permute.xlu0 %307  ;;  %v304_v51 = vpop.permute.xlu1 %303 }
 0x2e2   :  { %v310_v52 = vmul.f32 %v308_v50, %v215_v33  ;;  %v306_v53 = vmul.f32 %v1232_v49, %v304_v51  ;;  %v64_v33 = vsub.s32 4, %v1371_v8 }
 0x2e4   :  { %v311_v54 = vadd.f32 %v310_v52, %v306_v53  ;;  %v65_v34 = vrot.slane %v1382_v10, %v64_v33 }
 0x2e5   :  { %v314_v56 = vpop.permute.xlu1 %313  ;;  %v54_v58 = vpop.permute.xlu0 %53 }
 0x2e6   :  { %1233 = vtanh.f32 %v311_v54  ;;  %v98_v59 = vmul.f32 %v1406_v15, %v54_v58 }
 0x2e8   :  { %v112_v60 = vadd.f32 %v1412_v17, %v98_v59 }
 0x2f0   :  { %v1234_v55 = vpop.eup %1233 }
 0x2f1   :  { %v316_v57 = vmul.f32 %v1234_v55, %v314_v56 }
 0x2f3   :  { %1090 = vmatmul.mubr.msk.f32.vlgmr.msra.gmra.mrb[2].mxu0 %vm124_vm1, %v316_v57 }
 0x2f4   :  { %1184 = vmatpush3.bf16.msra.mxu0 %v1364_v5  ;;  %1111 = vmatprep.mubr.msk.f32.mxu0 %vm1308_vm0, %v1309_v7 }
 0x2f5   :  { %1185 = vmatprep.subr.bf16.mxu0 %v1307_v4 }
 0x2f8   :  { %1187 = vmatpush3.bf16.msra.mxu0 %v1377_v9 }
 0x2f9   :  { %1194 = vmatprep.subr.bf16.mxu0 %v1307_v4 }
 0x3c6   :  { %v386_v61 = vpop.f32.mrb[2].mxu0 }
 0x3c7   :  { %v390_v62 = vadd.f32 %v386_v61, %v112_v60  ;;  %v1091_v63 = vpop.f32.mrb[3].mxu0 }
 0x3c9   :  { %v1001_v0 = vmul.f32 -1.442695, %v390_v62 }
 0x3cb   :  { %1235 = vpow2.f32 %v1001_v0 }
 0x3d5   :  { %v1236_v1 = vpop.eup %1235 }
 0x3d6   :  { %v394_v2 = vadd.f32 1.0, %v1236_v1 }
 0x3d8   :  { %1237 = vrcp.f32 %v394_v2 }
 0x3d9   :  { %1239 = vtanh.f32 %v390_v62 }
 0x3e2   :  { %v1238_v3 = vpop.eup %1237 }
 0x3e3   :  { %403 = vrot.lane.b32.xlu0 %v1238_v3, %s1311_s14  ;;  %399 = vrot.lane.b32.xlu1 %v1238_v3, %s1310_s2  ;;  %v1240_v12 = vpop.eup %1239 }
 0x3e7   :  { %409 = vrot.lane.b32.xlu1 %v1238_v3, %s1312_s3  ;;  %60 = vbcast.lane.b32.xlu0 %v58_v11, 256 }
 0x455   :  { %v404_v13 = vpop.permute.xlu0 %403  ;;  %v400_v14 = vpop.permute.xlu1 %399 }
 0x456   :  { %v406_v16 = vmul.f32 %v404_v13, %v311_v54  ;;  %v402_v18 = vmul.f32 %v1240_v12, %v400_v14  ;;  %v71_v54 = vsub.s32 5, %v1371_v8 }
 0x458   :  { %v407_v19 = vadd.f32 %v406_v16, %v402_v18  ;;  %v72_v55 = vrot.slane %v1382_v10, %v71_v54 }
 0x459   :  { %v410_v21 = vpop.permute.xlu1 %409  ;;  %v61_v23 = vpop.permute.xlu0 %60 }
 0x45a   :  { %1241 = vtanh.f32 %v407_v19  ;;  %v99_v24 = vmul.f32 %v1406_v15, %v61_v23 }
 0x45c   :  { %v113_v25 = vadd.f32 %v1412_v17, %v99_v24 }
 0x464   :  { %v1242_v20 = vpop.eup %1241 }
 0x465   :  { %v412_v22 = vmul.f32 %v1242_v20, %v410_v21 }
 0x467   :  { %1101 = vmatmul.mubr.msk.f32.vlgmr.msra.gmra.mrb[2].mxu1 %vm124_vm1, %v412_v22 }
 0x468   :  { %1190 = vmatpush3.bf16.msra.mxu1 %v1364_v5  ;;  %1122 = vmatprep.mubr.msk.f32.mxu1 %vm1308_vm0, %v1309_v7 }
 0x469   :  { %1191 = vmatprep.subr.bf16.mxu1 %v1307_v4 }
 0x46c   :  { %1193 = vmatpush3.bf16.msra.mxu1 %v1377_v9 }
 0x46d   :  { %1200 = vmatprep.subr.bf16.mxu1 %v1307_v4 }
 0x53a   :  { %v482_v26 = vpop.f32.mrb[2].mxu1 }
 0x53b   :  { %v486_v27 = vadd.f32 %v482_v26, %v113_v25  ;;  %v1102_v28 = vpop.f32.mrb[3].mxu1 }
 0x53d   :  { %v1003_v29 = vmul.f32 -1.442695, %v486_v27 }
 0x53f   :  { %1243 = vpow2.f32 %v1003_v29 }
 0x549   :  { %v1244_v30 = vpop.eup %1243 }
 0x54a   :  { %v490_v31 = vadd.f32 1.0, %v1244_v30 }
 0x54c   :  { %1245 = vrcp.f32 %v490_v31 }
 0x54d   :  { %1247 = vtanh.f32 %v486_v27 }
 0x556   :  { %v1246_v32 = vpop.eup %1245 }
 0x557   :  { %499 = vrot.lane.b32.xlu0 %v1246_v32, %s1311_s14  ;;  %495 = vrot.lane.b32.xlu1 %v1246_v32, %s1310_s2  ;;  %v1248_v35 = vpop.eup %1247 }
 0x55b   :  { %505 = vrot.lane.b32.xlu1 %v1246_v32, %s1312_s3  ;;  %67 = vbcast.lane.b32.xlu0 %v65_v34, 256 }
 0x5c9   :  { %v500_v36 = vpop.permute.xlu0 %499  ;;  %v496_v37 = vpop.permute.xlu1 %495 }
 0x5ca   :  { %v502_v38 = vmul.f32 %v500_v36, %v407_v19  ;;  %v498_v39 = vmul.f32 %v1248_v35, %v496_v37 }
 0x5cc   :  { %v503_v40 = vadd.f32 %v502_v38, %v498_v39 }
 0x5cd   :  { %v506_v42 = vpop.permute.xlu1 %505  ;;  %v68_v44 = vpop.permute.xlu0 %67 }
 0x5ce   :  { %1249 = vtanh.f32 %v503_v40  ;;  %v100_v45 = vmul.f32 %v1406_v15, %v68_v44 }
 0x5d0   :  { %v114_v46 = vadd.f32 %v1412_v17, %v100_v45 }
 0x5d8   :  { %v1250_v41 = vpop.eup %1249 }
 0x5d9   :  { %v508_v43 = vmul.f32 %v1250_v41, %v506_v42 }
 0x5db   :  { %1112 = vmatmul.mubr.msk.f32.vlgmr.msra.gmra.mrb[4].mxu0 %vm124_vm1, %v508_v43 }
 0x5dc   :  { %1196 = vmatpush3.bf16.msra.mxu0 %v1364_v5  ;;  %1133 = vmatprep.mubr.msk.f32.mxu0 %vm1308_vm0, %v1309_v7 }
 0x5dd   :  { %1197 = vmatprep.subr.bf16.mxu0 %v1307_v4 }
 0x5e0   :  { %1199 = vmatpush3.bf16.msra.mxu0 %v1377_v9 }
 0x5e1   :  { %1206 = vmatprep.subr.bf16.mxu0 %v1307_v4 }
 0x6ae   :  { %v578_v47 = vpop.f32.mrb[4].mxu0 }
 0x6af   :  { %v582_v48 = vadd.f32 %v578_v47, %v114_v46  ;;  %v1113_v49 = vpop.f32.mrb[5].mxu0 }
 0x6b1   :  { %v1005_v50 = vmul.f32 -1.442695, %v582_v48 }
 0x6b3   :  { %1251 = vpow2.f32 %v1005_v50 }
 0x6bd   :  { %v1252_v51 = vpop.eup %1251 }
 0x6be   :  { %v586_v52 = vadd.f32 1.0, %v1252_v51 }
 0x6c0   :  { %1253 = vrcp.f32 %v586_v52 }
 0x6c1   :  { %1255 = vtanh.f32 %v582_v48 }
 0x6ca   :  { %v1254_v53 = vpop.eup %1253 }
 0x6cb   :  { %595 = vrot.lane.b32.xlu0 %v1254_v53, %s1311_s14  ;;  %591 = vrot.lane.b32.xlu1 %v1254_v53, %s1310_s2  ;;  %v1256_v56 = vpop.eup %1255 }
 0x6cf   :  { %601 = vrot.lane.b32.xlu1 %v1254_v53, %s1312_s3  ;;  %74 = vbcast.lane.b32.xlu0 %v72_v55, 256  ;;  %v893_v55 = vld [vmem:[%s1538_s4] sm:$0xff] }
 0x73d   :  { %v596_v57 = vpop.permute.xlu0 %595  ;;  %v592_v58 = vpop.permute.xlu1 %591 }
 0x73e   :  { %v598_v59 = vmul.f32 %v596_v57, %v503_v40  ;;  %v594_v60 = vmul.f32 %v1256_v56, %v592_v58  ;;  %v894_v56 = vld [vmem:[%s1538_s4 + $0x8] sm:$0xff] }
 0x73f   :  { %v1207_v57 = vpack.c.bf16 %v894_v56, %v893_v55 }
 0x740   :  { %v599_v61 = vadd.f32 %v598_v59, %v594_v60 }
 0x741   :  { %v602_v63 = vpop.permute.xlu1 %601  ;;  %v75_v1 = vpop.permute.xlu0 %74 }
 0x742   :  { %1257 = vtanh.f32 %v599_v61  ;;  %v101_v2 = vmul.f32 %v1406_v15, %v75_v1 }
 0x744   :  { %v115_v3 = vadd.f32 %v1412_v17, %v101_v2 }
 0x74c   :  { %v1258_v62 = vpop.eup %1257 }
 0x74d   :  { %v604_v0 = vmul.f32 %v1258_v62, %v602_v63 }
 0x74f   :  { %1123 = vmatmul.mubr.msk.f32.vlgmr.msra.gmra.mrb[4].mxu1 %vm124_vm1, %v604_v0 }
 0x750   :  { %1202 = vmatpush3.bf16.msra.mxu1 %v1364_v5  ;;  %1144 = vmatprep.mubr.msk.f32.mxu1 %vm1308_vm0, %v1309_v7 }
 0x751   :  { %1203 = vmatprep.subr.bf16.mxu1 %v1307_v4 }
 0x754   :  { %1205 = vmatpush3.bf16.msra.mxu1 %v1377_v9  ;;  %v78_v9 = vsub.s32 6, %v1371_v8 }
 0x756   :  { %v79_v18 = vrot.slane %v1382_v10, %v78_v9 }
 0x822   :  { %v674_v6 = vpop.f32.mrb[4].mxu1 }
 0x823   :  { %v678_v11 = vadd.f32 %v674_v6, %v115_v3  ;;  %v1124_v12 = vpop.f32.mrb[5].mxu1  ;;  %v1012_v6 = vld [vmem:[%s1539_s5] ss:$0 sm:$0xff] }
 0x825   :  { %v1007_v13 = vmul.f32 -1.442695, %v678_v11 }
 0x827   :  { %1259 = vpow2.f32 %v1007_v13 }
 0x831   :  { %v1260_v14 = vpop.eup %1259 }
 0x832   :  { %v682_v16 = vadd.f32 1.0, %v1260_v14 }
 0x834   :  { %1261 = vrcp.f32 %v682_v16 }
 0x835   :  { %1263 = vtanh.f32 %v678_v11 }
 0x83e   :  { %v1262_v5 = vpop.eup %1261 }
 0x83f   :  { %691 = vrot.lane.b32.xlu0 %v1262_v5, %s1311_s14  ;;  %687 = vrot.lane.b32.xlu1 %v1262_v5, %s1310_s2  ;;  %v1264_v19 = vpop.eup %1263 }
 0x843   :  { %697 = vrot.lane.b32.xlu1 %v1262_v5, %s1312_s3  ;;  %81 = vbcast.lane.b32.xlu0 %v79_v18, 256 }
 0x8b1   :  { %v692_v20 = vpop.permute.xlu0 %691  ;;  %v688_v21 = vpop.permute.xlu1 %687 }
 0x8b2   :  { %v694_v22 = vmul.f32 %v692_v20, %v599_v61  ;;  %v690_v23 = vmul.f32 %v1264_v19, %v688_v21 }
 0x8b4   :  { %v695_v24 = vadd.f32 %v694_v22, %v690_v23 }
 0x8b5   :  { %v698_v26 = vpop.permute.xlu1 %697  ;;  %v82_v28 = vpop.permute.xlu0 %81 }
 0x8b6   :  { %1265 = vtanh.f32 %v695_v24  ;;  %v102_v29 = vmul.f32 %v1406_v15, %v82_v28 }
 0x8b8   :  { %v116_v30 = vadd.f32 %v1412_v17, %v102_v29 }
 0x8c0   :  { %v1266_v25 = vpop.eup %1265 }
 0x8c1   :  { %v700_v27 = vmul.f32 %v1266_v25, %v698_v26 }
 0x8c3   :  { %1134 = vmatmul.mubr.msk.f32.vlgmr.msra.gmra.mrb[6].mxu0 %vm124_vm1, %v700_v27 }
 0x8c4   :  { %1155 = vmatprep.mubr.msk.f32.mxu0 %vm1308_vm0, %v1309_v7  ;;  %v85_v7 = vsub.s32 7, %v1371_v8  ;;  %1208 = vmatpush3.bf16.msra.mxu0 %v1207_v57 }
 0x8c5   :  { %1209 = vmatprep.subr.bf16.mxu0 %v1307_v4 }
 0x8c6   :  { %v86_v38 = vrot.slane %v1382_v10, %v85_v7 }
 0x996   :  { %v770_v31 = vpop.f32.mrb[6].mxu0 }
 0x997   :  { %v774_v32 = vadd.f32 %v770_v31, %v116_v30  ;;  %v1135_v33 = vpop.f32.mrb[7].mxu0 }
 0x999   :  { %v1009_v34 = vmul.f32 -1.442695, %v774_v32 }
 0x99b   :  { %1267 = vpow2.f32 %v1009_v34 }
 0x9a5   :  { %v1268_v35 = vpop.eup %1267 }
 0x9a6   :  { %v778_v36 = vadd.f32 1.0, %v1268_v35 }
 0x9a8   :  { %1269 = vrcp.f32 %v778_v36 }
 0x9a9   :  { %1271 = vtanh.f32 %v774_v32 }
 0x9b2   :  { %v1270_v37 = vpop.eup %1269 }
 0x9b3   :  { %787 = vrot.lane.b32.xlu0 %v1270_v37, %s1311_s14  ;;  %783 = vrot.lane.b32.xlu1 %v1270_v37, %s1310_s2  ;;  %v1272_v39 = vpop.eup %1271 }
 0x9b7   :  { %793 = vrot.lane.b32.xlu1 %v1270_v37, %s1312_s3  ;;  %88 = vbcast.lane.b32.xlu0 %v86_v38, 256 }
 0xa25   :  { %v788_v40 = vpop.permute.xlu0 %787  ;;  %v784_v41 = vpop.permute.xlu1 %783 }
 0xa26   :  { %v790_v42 = vmul.f32 %v788_v40, %v695_v24  ;;  %v786_v43 = vmul.f32 %v1272_v39, %v784_v41 }
 0xa28   :  { %v791_v44 = vadd.f32 %v790_v42, %v786_v43 }
 0xa29   :  { %v794_v46 = vpop.permute.xlu1 %793  ;;  %v89_v48 = vpop.permute.xlu0 %88 }
 0xa2a   :  { %1273 = vtanh.f32 %v791_v44  ;;  %v103_v49 = vmul.f32 %v1406_v15, %v89_v48  ;;  %v895_v15 = vld [vmem:[%s1538_s4 + $0x10] sm:$0xff] }
 0xa2c   :  { %v117_v8 = vadd.f32 %v1412_v17, %v103_v49  ;;  %v896_v17 = vld [vmem:[%s1538_s4 + $0x18] sm:$0xff] }
 0xa2d   :  { %v1210_v59 = vpack.c.bf16 %v896_v17, %v895_v15 }
 0xa2f   :  { %1211 = vmatpush3.bf16.msra.mxu0 %v1210_v59 }
 0xa34   :  { %v1274_v45 = vpop.eup %1273 }
 0xa35   :  { %v796_v47 = vmul.f32 %v1274_v45, %v794_v46 }
 0xa37   :  { %1145 = vmatmul.mubr.msk.f32.vlgmr.msra.gmra.mrb[6].mxu1 %vm124_vm1, %v796_v47 }
 0xb0a   :  { %v866_v10 = vpop.f32.mrb[6].mxu1 }
 0xb0b   :  { %v870_v50 = vadd.f32 %v866_v10, %v117_v8  ;;  %v1146_v51 = vpop.f32.mrb[7].mxu1 }
 0xb0d   :  { %v1011_v52 = vmul.f32 -1.442695, %v870_v50 }
 0xb0f   :  { %1275 = vpow2.f32 %v1011_v52 }
 0xb19   :  { %v1276_v53 = vpop.eup %1275 }
 0xb1a   :  { %v874_v54 = vadd.f32 1.0, %v1276_v53 }
 0xb1c   :  { %1277 = vrcp.f32 %v874_v54 }
 0xb1d   :  { %1279 = vtanh.f32 %v870_v50 }
 0xb26   :  { %v1278_v58 = vpop.eup %1277 }
 0xb27   :  { %883 = vrot.lane.b32.xlu0 %v1278_v58, %s1311_s14  ;;  %879 = vrot.lane.b32.xlu1 %v1278_v58, %s1310_s2  ;;  %v1280_v60 = vpop.eup %1279 }
 0xb2b   :  { %889 = vrot.lane.b32.xlu1 %v1278_v58, %s1312_s3 }
 0xb99   :  { %v884_v4 = vpop.permute.xlu0 %883  ;;  %v880_v61 = vpop.permute.xlu1 %879 }
 0xb9a   :  { %v886_v62 = vmul.f32 %v884_v4, %v791_v44  ;;  %v882_v63 = vmul.f32 %v1280_v60, %v880_v61 }
 0xb9c   :  { %v887_v0 = vadd.f32 %v886_v62, %v882_v63 }
 0xb9d   :  { %v890_v2 = vpop.permute.xlu1 %889 }
 0xb9e   :  { %1281 = vtanh.f32 %v887_v0 }
 0xba8   :  { %v1282_v1 = vpop.eup %1281 }
 0xba9   :  { %v892_v3 = vmul.f32 %v1282_v1, %v890_v2 }
 0xbab   :  { %1156 = vmatmul.mubr.msk.f32.vlgmr.msra.gmra.mrb[8].mxu0 %vm124_vm1, %v892_v3 }
 0xc7e   :  { %v973_v11 = vpop.f32.mrb[8].mxu0 }
 0xc7f   :  { %v974_v12 = vadd.f32 %v1012_v6, %v973_v11  ;;  %v1157_v13 = vpop.f32.mrb[9].mxu0 }
 0xc81   :  { %978 = vst.msk [vmem:[#allocation2] sm:$0xff] %vm977_vm2, %v974_v12 }
 0xc82   :  { %1294 = shalt.err (!%p1291_p4)
}
 0xc83   :  { %s1295_s29 = scalar_lea.hbm %s1541_s7, 128 }
 0xc84   :  { %p1296_p5 = scmp.ne.s32.totalorder %s1541_s7, %s1295_s29  ;;  %p1299_p6 = scmp.lt.u32.totalorder %s1295_s29, %s1541_s7 }
 0xc86   :  { %p1301_p7 = pnand %p1299_p6, %p1296_p5 }
 0xc88   :  { %1304 = shalt.err (!%p1301_p7)
}
 0xc89   :  { %988 = dma.vmem_to_hbm [thread:$0]  %s986_s25, 128, %s1541_s7, [#allocation3]  }
 0xc8a   :  { %1305 = dma.done.wait [#allocation3], 128  }
 0xc8b   :  { %1306 = vsyncadd [#allocation3], 4294967168 }
 0xc8c   :  { %992 = vsyncpa [#allocation3], 1 }

</bundles_post_ra>
